<compile_context>
chip_gen: v6e
topology: v6e:2x2x1
jax: 0.10.0
libtpu: 0.0.40
codegen_flags: <defaults>
</compile_context>

<pallas_src>
import functools

import jax
import jax.numpy as jnp
from jax import lax
from jax.experimental import pallas as pl
from jax.experimental.pallas import tpu as pltpu

NUM_FEATURES = 9
C1 = 64
C2 = 128
NUM_CLASSES = 2
KSIZE = 3
COMPUTE_DTYPE = jnp.bfloat16   # MXU-native operand dtype; accumulation stays f32


def _cnn1d_kernel(x_ref, w1s_ref, b1_ref, w2s_ref, b2_ref, pooled_ref):
    """One grid step: TB batch elements.

    x_ref:      (TB, L, Cin)   f32
    w1s_ref:    (Cin, 3*C1)    bf16, conv1 taps stacked along the output dim (k-major)
    b1_ref:     (1, C1)        f32
    w2s_ref:    (C1, 3*C2)     bf16
    b2_ref:     (1, C2)        f32
    pooled_ref: (TB, C2)       f32, relu(global-max-pooled conv2 pre-activations)
    """
    TB, L, Cin = x_ref.shape
    M = TB * L

    # Fold the batch block into the matmul M dimension: (TB*L, Cin).
    x = x_ref[...].reshape(M, Cin).astype(COMPUTE_DTYPE)

    # Rows whose left / right neighbour lies inside the same batch element.
    row_in_elem = lax.broadcasted_iota(jnp.int32, (M, 1), 0) % L
    has_left = row_in_elem != 0
    has_right = row_in_elem != (L - 1)

    def conv3(inp, ws_ref, b_ref, cout):
        # Single MXU call for all three taps: (M, K) @ (K, 3*cout), f32 accumulate.
        y = jnp.dot(inp, ws_ref[...], preferred_element_type=jnp.float32)
        y_l = y[:, 0 * cout:1 * cout]   # tap k=0: weight applied to x[t-1]
        y_c = y[:, 1 * cout:2 * cout]   # tap k=1: weight applied to x[t]
        y_r = y[:, 2 * cout:3 * cout]   # tap k=2: weight applied to x[t+1]
        # out[t] = y_l[t-1] + y_c[t] + y_r[t+1]; zero outside the element -> mask.
        left = jnp.where(has_left, pltpu.roll(y_l, shift=1, axis=0), 0.0)
        right = jnp.where(has_right, pltpu.roll(y_r, shift=M - 1, axis=0), 0.0)
        return y_c + left + right + b_ref[...]

    h1 = jnp.maximum(conv3(x, w1s_ref, b1_ref, C1), 0.0)         # (M, C1) f32
    z2 = conv3(h1.astype(COMPUTE_DTYPE), w2s_ref, b2_ref, C2)    # (M, C2) f32, pre-relu

    # AdaptiveMaxPool1d(1): global max over time per batch element, then ReLU
    # (relu is monotone, so relu(max) == max(relu)).  Single lane-dense block store.
    pooled_ref[...] = jnp.maximum(z2.reshape(TB, L, C2).max(axis=1), 0.0)


def cnn1d_forward(x, params, *, tb=8):
    """x: (B, seq_len, num_features) f32 -> (B, num_classes) f32."""
    w1s, b1, w2s, b2, wf, bf = params
    B, L, Cin = x.shape

    bp = ((B + tb - 1) // tb) * tb
    if bp != B:                       # pad batch to a multiple of TB; extra rows discarded
        x = jnp.pad(x, ((0, bp - B), (0, 0), (0, 0)))

    pooled = pl.pallas_call(
        _cnn1d_kernel,
        out_shape=jax.ShapeDtypeStruct((bp, C2), jnp.float32),
        grid_spec=pltpu.PrefetchScalarGridSpec(
            num_scalar_prefetch=0,
            grid=(bp // tb,),
            in_specs=[
                pl.BlockSpec((tb, L, Cin), lambda b: (b, 0, 0)),
                pl.BlockSpec((Cin, KSIZE * C1), lambda b: (0, 0)),
                pl.BlockSpec((1, C1), lambda b: (0, 0)),
                pl.BlockSpec((C1, KSIZE * C2), lambda b: (0, 0)),
                pl.BlockSpec((1, C2), lambda b: (0, 0)),
            ],
            out_specs=pl.BlockSpec((tb, C2), lambda b: (b, 0)),
        ),
        compiler_params=pltpu.CompilerParams(
            dimension_semantics=("parallel",)),
    )(x, w1s, b1, w2s, b2)

    pooled = pooled[:B]
    # fc (128 -> num_classes): single matmul with a 2-lane output -- kept in the XLA
    # wrapper so the kernel only does lane-dense (TB, 128) stores and no per-step MXU drain.
    return pooled @ wf + bf[None, :]


def init_params(key):
    """Deterministic synthetic parameters (PyTorch shapes, then rearranged for the kernel)."""
    k1, k2, k3, k4, k5, k6 = jax.random.split(key, 6)
    # torch layouts: conv weight (Cout, Cin, K), linear weight (out, in)
    w1_t = jax.random.normal(k1, (C1, NUM_FEATURES, KSIZE), jnp.float32) * 0.1
    b1_t = jax.random.normal(k2, (C1,), jnp.float32) * 0.1
    w2_t = jax.random.normal(k3, (C2, C1, KSIZE), jnp.float32) * 0.05
    b2_t = jax.random.normal(k4, (C2,), jnp.float32) * 0.1
    wf_t = jax.random.normal(k5, (NUM_CLASSES, C2), jnp.float32) * 0.1
    bf_t = jax.random.normal(k6, (NUM_CLASSES,), jnp.float32) * 0.1

    # kernel layouts:
    #   conv weights: taps stacked along the output dim, bf16 MXU operands
    #   w1s[cin, k*C1 + cout] == w1_t[cout, cin, k]
    w1s = jnp.transpose(w1_t, (1, 2, 0)).reshape(NUM_FEATURES, KSIZE * C1).astype(COMPUTE_DTYPE)
    w2s = jnp.transpose(w2_t, (1, 2, 0)).reshape(C1, KSIZE * C2).astype(COMPUTE_DTYPE)
    wf = jnp.transpose(wf_t, (1, 0))          # (C2, NUM_CLASSES)
    params_kernel = (w1s, b1_t[None, :], w2s, b2_t[None, :], wf, bf_t)
    params_torch = (w1_t, b1_t, w2_t, b2_t, wf_t, bf_t)
    return params_kernel, params_torch


def reference_forward(x, params_torch):
    """Pure-JAX f32 reference mirroring the PyTorch forward (NCW conv via lax.conv)."""
    w1_t, b1_t, w2_t, b2_t, wf_t, bf_t = params_torch
    xc = jnp.transpose(x, (0, 2, 1))  # (B, Cin, L)  -- x.permute(0, 2, 1)
    dn = ("NCH", "OIH", "NCH")
    h = lax.conv_general_dilated(xc, w1_t, (1,), ((1, 1),),
                                 dimension_numbers=dn) + b1_t[None, :, None]
    h = jnp.maximum(h, 0.0)
    h = lax.conv_general_dilated(h, w2_t, (1,), ((1, 1),),
                                 dimension_numbers=dn) + b2_t[None, :, None]
    h = jnp.maximum(h, 0.0)
    pooled = jnp.max(h, axis=-1)                    # (B, C2)
    return pooled @ wf_t.T + bf_t[None, :]          # (B, num_classes)


if __name__ == "__main__":
    key = jax.random.PRNGKey(0)
    kx, kp = jax.random.split(key)

    B, L = 16, 16   # 2 grid steps of TB=8 -> both v7x TensorCores get work
    x = jax.random.normal(kx, (B, L, NUM_FEATURES), jnp.float32)

    params_kernel, params_torch = init_params(kp)

    fwd = jax.jit(functools.partial(cnn1d_forward, tb=8))
    out = jax.block_until_ready(fwd(x, params_kernel))

    ref = reference_forward(x, params_torch)
    assert out.shape == (B, NUM_CLASSES)
    # bf16 MXU operands with f32 accumulation vs an all-f32 reference -> loosened tolerance.
    assert jnp.allclose(out, ref, atol=5e-2, rtol=5e-2), (out, ref)

    print("KERNEL_OK")
</pallas_src>

<mosaic_0001>
module attributes {stable_mosaic.version = 11 : i64} {
  func.func @_cnn1d_kernel(%arg0: i32, %arg1: memref<8x16x9xf32, #tpu.memory_space<vmem>>, %arg2: memref<9x192xbf16, #tpu.memory_space<vmem>>, %arg3: memref<1x64xf32, #tpu.memory_space<vmem>>, %arg4: memref<64x384xbf16, #tpu.memory_space<vmem>>, %arg5: memref<1x128xf32, #tpu.memory_space<vmem>>, %arg6: memref<8x128xf32, #tpu.memory_space<vmem>>) attributes {dimension_semantics = [#tpu.dimension_semantics<parallel>], iteration_bounds = array<i64: 2>, scalar_prefetch = 0 : i64, scratch_operands = 0 : i64, tpu.core_type = #tpu.core_type<tc>, window_params = [{transform_indices = @transform_0, window_bounds = array<i64: 8, 16, 9>}, {pipeline_mode = #tpu.pipeline_mode<synchronous>, transform_indices = @transform_1, window_bounds = array<i64: 9, 192>}, {pipeline_mode = #tpu.pipeline_mode<synchronous>, transform_indices = @transform_2, window_bounds = array<i64: 1, 64>}, {pipeline_mode = #tpu.pipeline_mode<synchronous>, transform_indices = @transform_3, window_bounds = array<i64: 64, 384>}, {pipeline_mode = #tpu.pipeline_mode<synchronous>, transform_indices = @transform_4, window_bounds = array<i64: 1, 128>}, {transform_indices = @transform_5, window_bounds = array<i64: 8, 128>}]} {
    %c0 = arith.constant 0 : index
    %c0_0 = arith.constant 0 : index
    %c0_1 = arith.constant 0 : index
    %0 = vector.load %arg1[%c0, %c0_0, %c0_1] : memref<8x16x9xf32, #tpu.memory_space<vmem>>, vector<8x16x9xf32>
    %1 = vector.shape_cast %0 : vector<8x16x9xf32> to vector<128x9xf32>
    %2 = arith.truncf %1 : vector<128x9xf32> to vector<128x9xbf16>
    %3 = tpu.iota {dimensions = array<i32: 0>} : vector<128x1xi32>
    %c16_i32 = arith.constant 16 : i32
    %c0_i32 = arith.constant 0 : i32
    %4 = arith.cmpi eq, %c16_i32, %c0_i32 : i32
    %c1_i32 = arith.constant 1 : i32
    %5 = arith.select %4, %c1_i32, %c16_i32 : i32
    %6 = vector.broadcast %5 : i32 to vector<128x1xi32>
    %7 = arith.remsi %3, %6 : vector<128x1xi32>
    %c0_i32_2 = arith.constant 0 : i32
    %8 = vector.broadcast %c0_i32_2 : i32 to vector<128x1xi32>
    %9 = arith.cmpi ne, %7, %8 : vector<128x1xi32>
    %c0_i32_3 = arith.constant 0 : i32
    %10 = vector.broadcast %c0_i32_3 : i32 to vector<128x1xi32>
    %11 = arith.cmpi slt, %7, %10 : vector<128x1xi32>
    %c0_i32_4 = arith.constant 0 : i32
    %12 = arith.cmpi slt, %5, %c0_i32_4 : i32
    %13 = vector.broadcast %12 : i1 to vector<128x1xi1>
    %14 = vector.broadcast %13 : vector<128x1xi1> to vector<128x1xi1>
    %15 = arith.xori %11, %14 : vector<128x1xi1>
    %16 = arith.andi %15, %9 : vector<128x1xi1>
    %17 = vector.broadcast %5 : i32 to vector<128x1xi32>
    %18 = arith.addi %7, %17 : vector<128x1xi32>
    %19 = arith.select %16, %18, %7 : vector<128x1xi1>, vector<128x1xi32>
    %c0_i32_5 = arith.constant 0 : i32
    %20 = vector.broadcast %c0_i32_5 : i32 to vector<128x1xi32>
    %21 = arith.cmpi ne, %19, %20 : vector<128x1xi32>
    %c15_i32 = arith.constant 15 : i32
    %22 = vector.broadcast %c15_i32 : i32 to vector<128x1xi32>
    %23 = arith.cmpi ne, %19, %22 : vector<128x1xi32>
    %c0_6 = arith.constant 0 : index
    %c0_7 = arith.constant 0 : index
    %24 = vector.load %arg2[%c0_6, %c0_7] : memref<9x192xbf16, #tpu.memory_space<vmem>>, vector<9x192xbf16>
    %cst = arith.constant dense<0.000000e+00> : vector<128x192xf32>
    %25 = tpu.matmul %2, %24, %cst {dimension_numbers = #tpu.dot_dimension_numbers<[1], [0], [0], [1], [0, 0, 1, 1], [], []>} : vector<128x9xbf16>, vector<9x192xbf16>, vector<128x192xf32> -> vector<128x192xf32>
    %26 = vector.extract_strided_slice %25 {offsets = [0, 0], sizes = [128, 64], strides = [1, 1]} : vector<128x192xf32> to vector<128x64xf32>
    %27 = vector.extract_strided_slice %25 {offsets = [0, 64], sizes = [128, 64], strides = [1, 1]} : vector<128x192xf32> to vector<128x64xf32>
    %28 = vector.extract_strided_slice %25 {offsets = [0, 128], sizes = [128, 64], strides = [1, 1]} : vector<128x192xf32> to vector<128x64xf32>
    %c1_i32_8 = arith.constant 1 : i32
    %29 = tpu.dynamic_rotate %26 by %c1_i32_8 dim 0 : vector<128x64xf32>, i32 -> vector<128x64xf32>
    %cst_9 = arith.constant 0.000000e+00 : f32
    %30 = vector.shape_cast %21 : vector<128x1xi1> to vector<128x1xi1>
    %31 = vector.broadcast %30 : vector<128x1xi1> to vector<128x64xi1>
    %32 = vector.broadcast %cst_9 : f32 to vector<128x64xf32>
    %33 = arith.select %31, %29, %32 : vector<128x64xi1>, vector<128x64xf32>
    %c127_i32 = arith.constant 127 : i32
    %34 = tpu.dynamic_rotate %28 by %c127_i32 dim 0 : vector<128x64xf32>, i32 -> vector<128x64xf32>
    %cst_10 = arith.constant 0.000000e+00 : f32
    %35 = vector.shape_cast %23 : vector<128x1xi1> to vector<128x1xi1>
    %36 = vector.broadcast %35 : vector<128x1xi1> to vector<128x64xi1>
    %37 = vector.broadcast %cst_10 : f32 to vector<128x64xf32>
    %38 = arith.select %36, %34, %37 : vector<128x64xi1>, vector<128x64xf32>
    %39 = arith.addf %27, %33 : vector<128x64xf32>
    %40 = arith.addf %39, %38 : vector<128x64xf32>
    %c0_11 = arith.constant 0 : index
    %c0_12 = arith.constant 0 : index
    %41 = vector.load %arg3[%c0_11, %c0_12] : memref<1x64xf32, #tpu.memory_space<vmem>>, vector<1x64xf32>
    %42 = vector.broadcast %41 : vector<1x64xf32> to vector<128x64xf32>
    %43 = arith.addf %40, %42 : vector<128x64xf32>
    %cst_13 = arith.constant 0.000000e+00 : f32
    %44 = vector.broadcast %cst_13 : f32 to vector<128x64xf32>
    %45 = arith.maximumf %43, %44 : vector<128x64xf32>
    %46 = arith.truncf %45 : vector<128x64xf32> to vector<128x64xbf16>
    %c0_14 = arith.constant 0 : index
    %c0_15 = arith.constant 0 : index
    %47 = vector.load %arg4[%c0_14, %c0_15] : memref<64x384xbf16, #tpu.memory_space<vmem>>, vector<64x384xbf16>
    %cst_16 = arith.constant dense<0.000000e+00> : vector<128x384xf32>
    %48 = tpu.matmul %46, %47, %cst_16 {dimension_numbers = #tpu.dot_dimension_numbers<[1], [0], [0], [1], [0, 0, 1, 1], [], []>} : vector<128x64xbf16>, vector<64x384xbf16>, vector<128x384xf32> -> vector<128x384xf32>
    %49 = vector.extract_strided_slice %48 {offsets = [0, 0], sizes = [128, 128], strides = [1, 1]} : vector<128x384xf32> to vector<128x128xf32>
    %50 = vector.extract_strided_slice %48 {offsets = [0, 128], sizes = [128, 128], strides = [1, 1]} : vector<128x384xf32> to vector<128x128xf32>
    %51 = vector.extract_strided_slice %48 {offsets = [0, 256], sizes = [128, 128], strides = [1, 1]} : vector<128x384xf32> to vector<128x128xf32>
    %c1_i32_17 = arith.constant 1 : i32
    %52 = tpu.dynamic_rotate %49 by %c1_i32_17 dim 0 : vector<128x128xf32>, i32 -> vector<128x128xf32>
    %cst_18 = arith.constant 0.000000e+00 : f32
    %53 = vector.shape_cast %21 : vector<128x1xi1> to vector<128x1xi1>
    %54 = vector.broadcast %53 : vector<128x1xi1> to vector<128x128xi1>
    %55 = vector.broadcast %cst_18 : f32 to vector<128x128xf32>
    %56 = arith.select %54, %52, %55 : vector<128x128xi1>, vector<128x128xf32>
    %c127_i32_19 = arith.constant 127 : i32
    %57 = tpu.dynamic_rotate %51 by %c127_i32_19 dim 0 : vector<128x128xf32>, i32 -> vector<128x128xf32>
    %cst_20 = arith.constant 0.000000e+00 : f32
    %58 = vector.shape_cast %23 : vector<128x1xi1> to vector<128x1xi1>
    %59 = vector.broadcast %58 : vector<128x1xi1> to vector<128x128xi1>
    %60 = vector.broadcast %cst_20 : f32 to vector<128x128xf32>
    %61 = arith.select %59, %57, %60 : vector<128x128xi1>, vector<128x128xf32>
    %62 = arith.addf %50, %56 : vector<128x128xf32>
    %63 = arith.addf %62, %61 : vector<128x128xf32>
    %c0_21 = arith.constant 0 : index
    %c0_22 = arith.constant 0 : index
    %64 = vector.load %arg5[%c0_21, %c0_22] : memref<1x128xf32, #tpu.memory_space<vmem>>, vector<1x128xf32>
    %65 = vector.broadcast %64 : vector<1x128xf32> to vector<128x128xf32>
    %66 = arith.addf %63, %65 : vector<128x128xf32>
    %67 = vector.shape_cast %66 : vector<128x128xf32> to vector<8x16x128xf32>
    %cst_23 = arith.constant dense<0xFF800000> : vector<8x128xf32>
    %68 = vector.multi_reduction <maximumf>, %67, %cst_23 [1] : vector<8x16x128xf32> to vector<8x128xf32>
    %cst_24 = arith.constant 0.000000e+00 : f32
    %69 = vector.broadcast %cst_24 : f32 to vector<8x128xf32>
    %70 = arith.maximumf %68, %69 : vector<8x128xf32>
    %c0_25 = arith.constant 0 : index
    %c0_26 = arith.constant 0 : index
    %71 = vector.load %arg6[%c0_25, %c0_26] : memref<8x128xf32, #tpu.memory_space<vmem>>, vector<8x128xf32>
    tpu.vector_store %arg6[%c0_25, %c0_26], %70 {strides = array<i32>} : memref<8x128xf32, #tpu.memory_space<vmem>>, vector<8x128xf32>,
    return
  }
  func.func @transform_0(%arg0: i32) -> (i32, i32, i32) {
    %c0_i32 = arith.constant 0 : i32
    %c0_i32_0 = arith.constant 0 : i32
    %c0_i32_1 = arith.constant 0 : i32
    return %arg0, %c0_i32, %c0_i32_0 : i32, i32, i32
  }
  func.func @transform_1(%arg0: i32) -> (i32, i32) {
    %c0_i32 = arith.constant 0 : i32
    %c0_i32_0 = arith.constant 0 : i32
    %c0_i32_1 = arith.constant 0 : i32
    return %c0_i32, %c0_i32_0 : i32, i32
  }
  func.func @transform_2(%arg0: i32) -> (i32, i32) {
    %c0_i32 = arith.constant 0 : i32
    %c0_i32_0 = arith.constant 0 : i32
    %c0_i32_1 = arith.constant 0 : i32
    return %c0_i32, %c0_i32_0 : i32, i32
  }
  func.func @transform_3(%arg0: i32) -> (i32, i32) {
    %c0_i32 = arith.constant 0 : i32
    %c0_i32_0 = arith.constant 0 : i32
    %c0_i32_1 = arith.constant 0 : i32
    return %c0_i32, %c0_i32_0 : i32, i32
  }
  func.func @transform_4(%arg0: i32) -> (i32, i32) {
    %c0_i32 = arith.constant 0 : i32
    %c0_i32_0 = arith.constant 0 : i32
    %c0_i32_1 = arith.constant 0 : i32
    return %c0_i32, %c0_i32_0 : i32, i32
  }
  func.func @transform_5(%arg0: i32) -> (i32, i32) {
    %c0_i32 = arith.constant 0 : i32
    %c0_i32_0 = arith.constant 0 : i32
    return %arg0, %c0_i32 : i32, i32
  }
}

</mosaic_0001>

<bundles_post_ra>
// kernel: cnn1d_forward.1
= control target key start
LH: loop header
LB: loop body
LE: loop exit
PB: predicated region body
PF: predicated region fallthrough
CT: control target
= control target key end

     0   :  { %s1815_s18 = smov 0   ;;  %s2438_s0 = inlined_call_operand.vmem [shape: f32[16,16,9], index: 0, kind: input, shape index: {}]   ;;  %s2439_s1 = inlined_call_operand.vmem [shape: bf16[9,192], index: 1, kind: input, shape index: {}]   ;;  %s2440_s2 = inlined_call_operand.vmem [shape: f32[1,64], index: 2, kind: input, shape index: {}]   ;;  %s2441_s3 = inlined_call_operand.vmem [shape: bf16[64,384], index: 3, kind: input, shape index: {}]   ;;  %s2442_s4 = inlined_call_operand.vmem [shape: f32[1,128], index: 4, kind: input, shape index: {}]   ;;  %s2443_s5 = inlined_call_operand.vmem [shape: f32[16,128], index: 5, kind: output, shape index: {}]  }
   0x1 LB: > { %s1821_s19 = sadd.s32 4294967295, %s1780_s18   ;;  %p1658_p0 = scmp.ge.s32.totalorder %s1780_s18, 1  ;;  %s1780_s18 = sphi %s1815_s18, %s15_s18  }
   0x2   : > { %p189_p1 = scmp.lt.s32.totalorder %s1780_s18, 3 }
   0x4   : > { %p190_p2 = pnand %p1658_p0, %p189_p1 }
   0x5   : > { %s1659_s24 = sshll.u32 (!%p190_p2), %s1821_s19, 3  ;;  %s1784_s29 = smov (!%p190_p2), 64  }
   0x6   : > { %193 = sbr.rel (%p190_p2) target bundleno = 758 (0x2f6), region = 40  ;;  %p218_p3 = scmp.lt.s32.totalorder (!%p190_p2), %s1659_s24, 15 }
   0x7   : > { %p224_p4 = scmp.lt.s32.totalorder (!%p190_p2), %s1821_s19, 1 }
   0xb   : > { %v1755_v0 = vld [vmem:[%s2439_s1 + $0x4] ss:$8 sps:$4 sm:$0x1f]   ;;  %vm529_vm0 = vcmask 1043456   ;;  %vm530_vm1 = vcmask 1044480   ;;  %v1782_v2 = vmov 65535   ;;  %v253_v32 = vlaneseq }
   0xc   : > { %v1757_v1 = vld [vmem:[%s2439_s1] ss:$8 sps:$4 sm:$0x1f]   ;;  %v531_v3 = vsel %vm529_vm0, 4294967295, %v1782_v2  ;;  %v1783_v5 = vmov 0   ;;  %s2497_s24 = smov (!%p218_p3, %s1659_s24), 15 }
   0xd   : > { %v532_v4 = vsel %vm530_vm1, %v531_v3, 0  ;;  %571 = vmatprep.mubr.bf16.mxu0 %v1783_v5  ;;  %631 = vmatprep.mubr.bf16.mxu1 %v1783_v5  ;;  %s1705_s25 = sshll.u32 %s2497_s24, 4  ;;  %vm504_vm2 = vcmask 72704   ;;  %v1872_v34 = vshrl.u32 %v253_v32, 7  ;;  %v2449_v2 = vmov 0  ;;  %s2499_s19 = smov (!%p224_p4, %s1821_s19), 1 }
   0xe   : > { %v537_v6 = vand.u32 %v1755_v0, %v532_v4  ;;  %v534_v7 = vand.u32 %v1757_v1, %v532_v4  ;;  %s1837_s28 = scalar_lea.vmem %s2438_s0, %s1705_s25  ;;  %s1662_s10 = sshll.u32 %s2499_s19, 3 }
   0xf   : > { %v229_v8 = vld [vmem:[%s1837_s28] sm:$0xff]  ;;  %v230_v9 = vld [vmem:[%s1837_s28 + $0x8] sm:$0xff]  ;;  %v231_v14 = vld [vmem:[%s1837_s28 + $0x10] sm:$0xff]  ;;  %v255_v39 = vadd.s32 8, %v1872_v34  ;;  %vm668_vm3 = vcmp.lt.s32.totalorder %v1872_v34, 1  ;;  %vm2446_vm4 = vcmp.lt.s32.totalorder %v1872_v34, 7  ;;  %s227_s13 = scalar_lea.vmem %s2443_s5, %s1662_s10 }
  0x10   : > { %553 = vmatprep.subr.bf16.mxu0 %v537_v6  ;;  %1742 = vmatprep.subr.bf16.mxu1 %v537_v6  ;;  %v241_v10 = vld [vmem:[%s1837_s28 + $0x60] sm:$0xff]  ;;  %v245_v11 = vpack.c.bf16 %v230_v9, %v229_v8  ;;  %v242_v12 = vld [vmem:[%s1837_s28 + $0x68] sm:$0xff]  ;;  %v232_v15 = vld [vmem:[%s1837_s28 + $0x18] sm:$0xff]  ;;  %v256_v49 = vadd.s32 16, %v1872_v34  ;;  %v274_v54 = vand.u32 15, %v1872_v34  ;;  %v258_v6 = vadd.s32 32, %v1872_v34 }
  0x11   : > { %554 = vmatpush1.bf16.msra.mxu0 %v534_v7  ;;  %1743 = vmatpush1.bf16.msra.mxu1 %v534_v7  ;;  %v251_v13 = vpack.c.bf16 %v242_v12, %v241_v10  ;;  %v243_v16 = vld [vmem:[%s1837_s28 + $0x70] sm:$0xff]  ;;  %v244_v17 = vld [vmem:[%s1837_s28 + $0x78] sm:$0xff]  ;;  %v246_v18 = vpack.c.bf16 %v232_v15, %v231_v14  ;;  %v233_v20 = vld [vmem:[%s1837_s28 + $0x20] sm:$0xff]  ;;  %v281_v48 = vand.u32 15, %v255_v39 }
  0x12   : > { %v252_v19 = vpack.c.bf16 %v244_v17, %v243_v16  ;;  %v234_v21 = vld [vmem:[%s1837_s28 + $0x28] sm:$0xff]  ;;  %v235_v23 = vld [vmem:[%s1837_s28 + $0x30] sm:$0xff]  ;;  %v236_v24 = vld [vmem:[%s1837_s28 + $0x38] sm:$0xff]  ;;  %v288_v59 = vand.u32 15, %v256_v49  ;;  %vm1922_vm6 = vcmp.ne.s32.totalorder %v274_v54, 0  ;;  %v302_v16 = vand.u32 15, %v258_v6 }
  0x13   : > { %v247_v22 = vpack.c.bf16 %v234_v21, %v233_v20  ;;  %v248_v25 = vpack.c.bf16 %v236_v24, %v235_v23  ;;  %v237_v26 = vld [vmem:[%s1837_s28 + $0x40] sm:$0xff]  ;;  %v238_v27 = vld [vmem:[%s1837_s28 + $0x48] sm:$0xff]  ;;  %v239_v29 = vld [vmem:[%s1837_s28 + $0x50] sm:$0xff]  ;;  %vm1909_vm5 = vcmp.ne.s32.totalorder %v281_v48, 15  ;;  %v2450_v2 = vsel %vm1922_vm6, 4294967295, %v2449_v2 }
  0x14   : > { %1665 = vmatmul.mubr.msk.bf16.vlgmr.msra.gmra.mxu0 %vm504_vm2, %v245_v11  ;;  %1671 = vmatmul.mubr.msk.bf16.vlgmr.msra.gmra.mxu1 %vm504_vm2, %v251_v13  ;;  %v249_v28 = vpack.c.bf16 %v238_v27, %v237_v26  ;;  %v240_v30 = vld [vmem:[%s1837_s28 + $0x58] sm:$0xff]  ;;  %vm1927_vm7 = vcmp.ne.s32.totalorder %v288_v59, 0  ;;  %v257_v13 = vadd.s32 24, %v1872_v34  ;;  %v1673_v15 = vld [vmem:[%s2440_s2] ss:$0 sm:$0xff]  ;;  %vm1958_vm8 = vcmp.ne.s32.totalorder %v302_v16, 0 }
  0x15   : > { %581 = vmatprep.mubr.bf16.mxu0 %v1783_v5  ;;  %641 = vmatprep.mubr.bf16.mxu1 %v1783_v5  ;;  %v250_v31 = vpack.c.bf16 %v240_v30, %v239_v29 }
  0x1c   : > { %1666 = vmatmul.mubr.msk.bf16.gmra.mxu0 %vm504_vm2, %v246_v18  ;;  %1672 = vmatmul.mubr.msk.bf16.gmra.mxu1 %vm504_vm2, %v252_v19 }
  0x1d   : > { %591 = vmatprep.mubr.bf16.mxu0 %v1783_v5  ;;  %1184 = vmatprep.mubr.bf16.mxu1 %v1783_v5 }
  0x24   : > { %1667 = vmatmul.mubr.msk.bf16.gmra.mxu0 %vm504_vm2, %v247_v22  ;;  %v295_v22 = vand.u32 15, %v257_v13 }
  0x25   : > { %601 = vmatprep.mubr.bf16.mxu0 %v1783_v5 }
  0x26   : > { %vm1973_vm9 = vcmp.ne.s32.totalorder %v295_v22, 15  ;;  %v264_v22 = vadd.s32 80, %v1872_v34 }
  0x2c   : > { %1668 = vmatmul.mubr.msk.bf16.gmra.mxu0 %vm504_vm2, %v248_v25  ;;  %v260_v25 = vadd.s32 48, %v1872_v34 }
  0x2d   : > { %611 = vmatprep.mubr.bf16.mxu0 %v1783_v5 }
  0x34   : > { %1669 = vmatmul.mubr.msk.bf16.gmra.mxu0 %vm504_vm2, %v249_v28  ;;  %v259_v28 = vadd.s32 40, %v1872_v34 }
  0x35   : > { %621 = vmatprep.mubr.bf16.mxu0 %v1783_v5 }
  0x36   : > { %v309_v48 = vand.u32 15, %v259_v28 }
  0x38   : > { %vm2001_vm11 = vcmp.ne.s32.totalorder %v309_v48, 15 }
  0x3c   : > { %1670 = vmatmul.mubr.msk.bf16.gmra.mxu0 %vm504_vm2, %v250_v31 }
  0xd4   : > { %v1870_v33 = vpop.f32.mrf.mxu0  ;;  %v1874_v35 = vpop.f32.mrf.mxu1 }
  0xd5   : > { %v652_v37 = vrot.slane %v1870_v33, 7 }
  0xd6   : > { %v1876_v36 = vpop.f32.mrf.mxu0  ;;  %v1879_v38 = vpop.f32.mrf.mxu1 }
  0xd7   : > { %v733_v41 = vrot.slane %v1876_v36, 1  ;;  %v1771_v36 = vld [vmem:[%s2441_s3 + $0x38] ss:$12 sps:$4 sm:$0xff]  }
  0xd8   : > { %v1882_v40 = vpop.f32.mrf.mxu0  ;;  %v1887_v43 = vpop.f32.mrf.mxu1 }
  0xd9   : > { %v653_v42 = vrot.slane %v1882_v40, 7 }
  0xda   : > { %v579_v44 = vpop.f32.mrf.mxu0  ;;  %v1890_v46 = vpop.f32.mrf.mxu1 }
  0xdb   : > { %v734_v45 = vrot.slane %v579_v44, 1  ;;  %v683_v47 = vsel %vm668_vm3, %v652_v37, %v653_v42 }
  0xdc   : > { %832 = vrot.lane.b32.xlu0 %v683_v47, %s1784_s29  ;;  %v1896_v50 = vpop.f32.mrf.mxu0  ;;  %v1898_v51 = vpop.f32.mrf.mxu1 }
  0xdd   : > { %v764_v52 = vsel %vm2446_vm4, %v733_v41, %v734_v45  ;;  %v654_v55 = vrot.slane %v1896_v50, 7 }
  0xde   : > { %910 = vrot.lane.b32.xlu1 %v764_v52, %s1784_s29  ;;  %v585_v53 = vpop.f32.mrf.mxu0  ;;  %v1907_v56 = vpop.f32.mrf.mxu1 }
  0xdf   : > { %v735_v57 = vrot.slane %v585_v53, 1  ;;  %v682_v4 = vsel %vm668_vm3, %v653_v42, %v654_v55  ;;  %v316_v42 = vand.u32 15, %v260_v25 }
  0xe0   : > { %v1913_v60 = vpop.f32.mrf.mxu0  ;;  %v1915_v61 = vpop.f32.mrf.mxu1  ;;  %v719_v12 = vsel %vm1927_vm7, %v682_v4, 0.0 }
  0xe1   : > { %v763_v62 = vsel %vm2446_vm4, %v734_v45, %v735_v57  ;;  %v667_v63 = vrot.slane %v1915_v61, 7  ;;  %v655_v18 = vrot.slane %v1913_v60, 7  ;;  %vm1990_vm10 = vcmp.ne.s32.totalorder %v316_v42, 0 }
  0xe2   : > { %v589_v0 = vpop.f32.mrf.mxu0  ;;  %v799_v1 = vsel %vm1909_vm5, %v763_v62, 0.0 }
  0xe3   : > { %912 = vrot.lane.b32.xlu1 %v799_v1, %s1784_s29  ;;  %v684_v8 = vsel %vm668_vm3, %v667_v63, %v652_v37  ;;  %v736_v10 = vrot.slane %v589_v0, 1  ;;  %v681_v27 = vsel %vm668_vm3, %v654_v55, %v655_v18 }
  0xe4   : > { %v1934_v7 = vpop.f32.mrf.mxu0  ;;  %v717_v9 = vsel %vm1922_vm6, %v684_v8, 0.0 }
  0xe5   : > { %830 = vrot.lane.b32.xlu0 %v717_v9, %s1784_s29  ;;  %v656_v14 = vrot.slane %v1934_v7, 7  ;;  %v762_v21 = vsel %vm2446_vm4, %v735_v57, %v736_v10  ;;  %v262_v57 = vadd.s32 64, %v1872_v34  ;;  %v261_v9 = vadd.s32 56, %v1872_v34 }
  0xe6   : > { %v595_v11 = vpop.f32.mrf.mxu0 }
  0xe7   : > { %834 = vrot.lane.b32.xlu1 %v719_v12, %s1784_s29  ;;  %v737_v19 = vrot.slane %v595_v11, 1  ;;  %v680_v24 = vsel %vm668_vm3, %v655_v18, %v656_v14  ;;  %v330_v11 = vand.u32 15, %v262_v57 }
  0xe8   : > { %v1951_v17 = vpop.f32.mrf.mxu0  ;;  %v721_v31 = vsel %vm1958_vm8, %v680_v24, 0.0 }
  0xe9   : > { %980 = vrot.lane.b32.xlu0 %v1673_v15, %s1784_s29  ;;  %v761_v37 = vsel %vm2446_vm4, %v736_v10, %v737_v19  ;;  %v657_v45 = vrot.slane %v1951_v17, 7  ;;  %vm2022_vm12 = vcmp.ne.s32.totalorder %v330_v11, 0 }
  0xea   : > { %v599_v20 = vpop.f32.mrf.mxu0  ;;  %v801_v47 = vsel %vm1973_vm9, %v761_v37, 0.0 }
  0xeb   : > { %914 = vrot.lane.b32.xlu1 %v762_v21, %s1784_s29  ;;  %v738_v29 = vrot.slane %v599_v20, 1  ;;  %v679_v62 = vsel %vm668_vm3, %v656_v14, %v657_v45 }
  0xec   : > { %v1965_v26 = vpop.f32.mrf.mxu0 }
  0xed   : > { %836 = vrot.lane.b32.xlu0 %v681_v27, %s1784_s29  ;;  %v658_v39 = vrot.slane %v1965_v26, 7  ;;  %v760_v53 = vsel %vm2446_vm4, %v737_v19, %v738_v29  ;;  %v323_v19 = vand.u32 15, %v261_v9  ;;  %v263_v27 = vadd.s32 72, %v1872_v34 }
  0xee   : > { %v605_v30 = vpop.f32.mrf.mxu0 }
  0xef   : > { %838 = vrot.lane.b32.xlu1 %v721_v31, %s1784_s29  ;;  %v739_v49 = vrot.slane %v605_v30, 1  ;;  %v678_v55 = vsel %vm668_vm3, %v657_v45, %v658_v39  ;;  %vm2037_vm13 = vcmp.ne.s32.totalorder %v323_v19, 15 }
  0xf0   : > { %v1981_v44 = vpop.f32.mrf.mxu0  ;;  %v723_v6 = vsel %vm1990_vm10, %v678_v55, 0.0 }
  0xf1   : > { %916 = vrot.lane.b32.xlu0 %v801_v47, %s1784_s29  ;;  %v759_v8 = vsel %vm2446_vm4, %v738_v29, %v739_v49  ;;  %v659_v13 = vrot.slane %v1981_v44, 7 }
  0xf2   : > { %v609_v52 = vpop.f32.mrf.mxu0  ;;  %v803_v14 = vsel %vm2001_vm11, %v759_v8, 0.0 }
  0xf3   : > { %918 = vrot.lane.b32.xlu1 %v760_v53, %s1784_s29  ;;  %v740_v1 = vrot.slane %v609_v52, 1  ;;  %v677_v25 = vsel %vm668_vm3, %v658_v39, %v659_v13  ;;  %v344_v39 = vand.u32 15, %v264_v22 }
  0xf4   : > { %v1997_v59 = vpop.f32.mrf.mxu0 }
  0xf5   : > { %840 = vrot.lane.b32.xlu0 %v679_v62, %s1784_s29  ;;  %v660_v10 = vrot.slane %v1997_v59, 7  ;;  %v758_v18 = vsel %vm2446_vm4, %v739_v49, %v740_v1  ;;  %v337_v49 = vand.u32 15, %v263_v27  ;;  %vm2054_vm14 = vcmp.ne.s32.totalorder %v344_v39, 0 }
  0xf6   : > { %v615_v4 = vpop.f32.mrf.mxu0  ;;  %v745_v27 = vrot.slane %v1879_v38, 1  ;;  %v666_v38 = vrot.slane %v1898_v51, 7 }
  0xf7   : > { %842 = vrot.lane.b32.xlu1 %v723_v6, %s1784_s29  ;;  %v741_v15 = vrot.slane %v615_v4, 1  ;;  %v676_v21 = vsel %vm668_vm3, %v659_v13, %v660_v10  ;;  %vm2063_vm15 = vcmp.ne.s32.totalorder %v337_v49, 15  ;;  %v265_v13 = vadd.s32 88, %v1872_v34 }
  0xf8   : > { %v2013_v12 = vpop.f32.mrf.mxu0  ;;  %v725_v30 = vsel %vm2022_vm12, %v676_v21, 0.0 }
  0xf9   : > { %920 = vrot.lane.b32.xlu0 %v803_v14, %s1784_s29  ;;  %v757_v37 = vsel %vm2446_vm4, %v740_v1, %v741_v15  ;;  %v661_v47 = vrot.slane %v2013_v12, 7  ;;  %v266_v1 = vadd.s32 96, %v1872_v34  ;;  %v351_v19 = vand.u32 15, %v265_v13 }
  0xfa   : > { %v619_v16 = vpop.f32.mrf.mxu0  ;;  %v805_v48 = vsel %vm2037_vm13, %v757_v37, 0.0  ;;  %v269_v13 = vadd.s32 120, %v1872_v34 }
  0xfb   : > { %922 = vrot.lane.b32.xlu1 %v758_v18, %s1784_s29  ;;  %v742_v28 = vrot.slane %v619_v16, 1  ;;  %v675_v4 = vsel %vm668_vm3, %v660_v10, %v661_v47  ;;  %v358_v10 = vand.u32 15, %v266_v1  ;;  %vm2097_vm1 = vcmp.ne.s32.totalorder %v351_v19, 15  ;;  %v1760_v19 = vld [vmem:[%s2441_s3 + $0x4c] ss:$12 sps:$4 sm:$0xff]  }
  0xfc   : > { %v2029_v24 = vpop.f32.mrf.mxu0  ;;  %1160 = vmatprep.subr.bf16.mxu1 %v1760_v19 }
  0xfd   : > { %844 = vrot.lane.b32.xlu0 %v677_v25, %s1784_s29  ;;  %v662_v42 = vrot.slane %v2029_v24, 7  ;;  %v756_v53 = vsel %vm2446_vm4, %v741_v15, %v742_v28  ;;  %v664_v15 = vrot.slane %v1874_v35, 7  ;;  %vm2082_vm0 = vcmp.ne.s32.totalorder %v358_v10, 0 }
  0xfe   : > { %v625_v29 = vpop.f32.mrf.mxu0  ;;  %v268_v25 = vadd.s32 112, %v1872_v34 }
  0xff   : > { %846 = vrot.lane.b32.xlu1 %v725_v30, %s1784_s29  ;;  %v743_v52 = vrot.slane %v625_v29, 1  ;;  %v674_v62 = vsel %vm668_vm3, %v661_v47, %v662_v42  ;;  %v267_v29 = vadd.s32 104, %v1872_v34  ;;  %v746_v30 = vrot.slane %v1890_v46, 1 }
 0x100   : > { %v2045_v45 = vpop.f32.mrf.mxu0  ;;  %v727_v9 = vsel %vm2054_vm14, %v674_v62, 0.0 }
 0x101   : > { %924 = vrot.lane.b32.xlu0 %v805_v48, %s1784_s29  ;;  %v755_v11 = vsel %vm2446_vm4, %v742_v28, %v743_v52  ;;  %v663_v14 = vrot.slane %v2045_v45, 7  ;;  %v665_v48 = vrot.slane %v1887_v43, 7  ;;  %v365_v49 = vand.u32 15, %v267_v29  ;;  %v1767_v29 = vld [vmem:[%s2441_s3 + $0x1c] ss:$12 sps:$4 sm:$0xff]  }
 0x102   : > { %v629_v55 = vpop.f32.mrf.mxu0  ;;  %v807_v16 = vsel %vm2063_vm15, %v755_v11, 0.0 }
 0x103   : > { %926 = vrot.lane.b32.xlu1 %v756_v53, %s1784_s29  ;;  %v744_v8 = vrot.slane %v629_v55, 1  ;;  %v672_v22 = vsel %vm668_vm3, %v663_v14, %v664_v15  ;;  %v673_v28 = vsel %vm668_vm3, %v662_v42, %v663_v14  ;;  %v372_v42 = vand.u32 15, %v268_v25  ;;  %v649_v55 = vpop.f32.mrf.mxu1 }
 0x104   : > { %v729_v37 = vsel %vm2082_vm0, %v672_v22, 0.0  ;;  %v752_v53 = vsel %vm2446_vm4, %v745_v27, %v746_v30  ;;  %v670_v1 = vsel %vm668_vm3, %v665_v48, %v666_v38  ;;  %vm2121_vm6 = vcmp.ne.s32.totalorder %v365_v49, 15  ;;  %v1773_v49 = vld [vmem:[%s2441_s3 + $0x8] ss:$12 sps:$4 sm:$0xff]  }
 0x105   : > { %848 = vrot.lane.b32.xlu0 %v675_v4, %s1784_s29  ;;  %v754_v18 = vsel %vm2446_vm4, %v743_v52, %v744_v8  ;;  %v753_v47 = vsel %vm2446_vm4, %v744_v8, %v745_v27  ;;  %v747_v52 = vrot.slane %v1907_v56, 1  ;;  %vm2113_vm2 = vcmp.ne.s32.totalorder %v372_v42, 0  ;;  %v1764_v27 = vld [vmem:[%s2441_s3 + $0x50] ss:$12 sps:$4 sm:$0xff]  }
 0x106   : > { %v809_v46 = vsel %vm2097_vm1, %v753_v47, 0.0  ;;  %v671_v4 = vsel %vm668_vm3, %v664_v15, %v665_v48  ;;  %v2475_v56 = vmov 0  ;;  %v748_v8 = vrot.slane %v649_v55, 1  ;;  %1718 = vmatprep.subr.bf16.mxu0 %v1764_v27  ;;  %v1768_v47 = vld [vmem:[%s2441_s3] ss:$12 sps:$4 sm:$0xff]  }
 0x107   : > { %850 = vrot.lane.b32.xlu1 %v727_v9, %s1784_s29  ;;  %v2476_v56 = vsel %vm2121_vm6, 4294967295, %v2475_v56  ;;  %v731_v9 = vsel %vm2113_vm2, %v670_v1, 0.0  ;;  %v751_v11 = vsel %vm2446_vm4, %v746_v30, %v747_v52  ;;  %v379_v15 = vand.u32 15, %v269_v13  ;;  %1719 = vmatpush3.bf16.msra.mxu0 %v1764_v27  ;;  %v1765_v30 = vld [vmem:[%s2441_s3 + $0x18] ss:$12 sps:$4 sm:$0xff]  }
 0x108   : > { %v811_v14 = vsel %vm2121_vm6, %v751_v11, 0.0  ;;  %v750_v10 = vsel %vm2446_vm4, %v747_v52, %v748_v8  ;;  %v765_v25 = vsel %vm2446_vm4, %v748_v8, %v733_v41  ;;  %1720 = vmatprep.subr.bf16.mxu0 %v1771_v36  ;;  %vm1127_vm4 = vcmask 523264  }
 0x109   : > { %928 = vrot.lane.b32.xlu0 %v807_v16, %s1784_s29  ;;  %v669_v16 = vsel %vm668_vm3, %v666_v38, %v667_v63  ;;  %vm2149_vm6 = vcmp.ne.s32.totalorder %v379_v15, 15  ;;  %v1763_v63 = vld [vmem:[%s2441_s3 + $0x34] ss:$12 sps:$4 sm:$0xff]  }
 0x10a   : > { %v813_v41 = vsel %vm2149_vm6, %v765_v25, 0.0 }
 0x10b   : > { %930 = vrot.lane.b32.xlu1 %v754_v18, %s1784_s29  ;;  %v1758_v18 = vld [vmem:[%s2441_s3 + $0x48] ss:$12 sps:$4 sm:$0xff]   ;;  %1721 = vmatpush3.bf16.msra.mxu0 %v1771_v36 }
 0x10c   : > { %1161 = vmatpush1.bf16.msra.mxu1 %v1758_v18 }
 0x10d   : > { %852 = vrot.lane.b32.xlu0 %v673_v28, %s1784_s29  ;;  %v1761_v28 = vld [vmem:[%s2441_s3 + $0x30] ss:$12 sps:$4 sm:$0xff]   ;;  %1162 = vmatprep.subr.bf16.mxu1 %v1763_v63 }
 0x10f   : > { %854 = vrot.lane.b32.xlu1 %v729_v37, %s1784_s29  ;;  %v1770_v37 = vld [vmem:[%s2441_s3 + $0x4] ss:$12 sps:$4 sm:$0xff]  }
 0x110   : > { %1163 = vmatpush1.bf16.msra.mxu1 %v1761_v28 }
 0x111   : > { %932 = vrot.lane.b32.xlu0 %v809_v46, %s1784_s29  ;;  %1164 = vmatprep.subr.bf16.mxu1 %v1767_v29  ;;  %v1772_v46 = vld [vmem:[%s2441_s3 + $0x20] ss:$12 sps:$4 sm:$0xff]  }
 0x112   : > { %1722 = vmatprep.subr.bf16.mxu0 %v1772_v46 }
 0x113   : > { %934 = vrot.lane.b32.xlu1 %v752_v53, %s1784_s29  ;;  %1723 = vmatpush3.bf16.msra.mxu0 %v1772_v46 }
 0x114   : > { %1165 = vmatpush1.bf16.msra.mxu1 %v1765_v30  ;;  %1724 = vmatprep.subr.bf16.mxu0 %v1773_v49 }
 0x115   : > { %856 = vrot.lane.b32.xlu0 %v671_v4, %s1784_s29  ;;  %1166 = vmatprep.subr.bf16.mxu1 %v1770_v37 }
 0x117   : > { %858 = vrot.lane.b32.xlu1 %v731_v9, %s1784_s29  ;;  %1725 = vmatpush3.bf16.msra.mxu0 %v1773_v49 }
 0x118   : > { %1167 = vmatpush1.bf16.msra.mxu1 %v1768_v47 }
 0x119   : > { %936 = vrot.lane.b32.xlu0 %v811_v14, %s1784_s29 }
 0x11b   : > { %938 = vrot.lane.b32.xlu1 %v750_v10, %s1784_s29 }
 0x11d   : > { %860 = vrot.lane.b32.xlu0 %v669_v16, %s1784_s29 }
 0x121   : > { %940 = vrot.lane.b32.xlu0 %v813_v41, %s1784_s29 }
 0x14e   : > { %v833_v42 = vpop.permute.xlu0 %832 }
 0x14f   : > { %v879_v53 = vadd.f32 %v833_v42, %v1882_v40 }
 0x150   : > { %v911_v38 = vpop.permute.xlu1 %910 }
 0x155   : > { %v913_v48 = vpop.permute.xlu1 %912 }
 0x156   : > { %v959_v4 = vadd.f32 %v913_v48, %v879_v53 }
 0x157   : > { %v831_v52 = vpop.permute.xlu0 %830 }
 0x158   : > { %v878_v55 = vadd.f32 %v831_v52, %v1870_v33 }
 0x159   : > { %v835_v1 = vpop.permute.xlu1 %834 }
 0x15a   : > { %v958_v8 = vadd.f32 %v911_v38, %v878_v55  ;;  %v880_v10 = vadd.f32 %v835_v1, %v1896_v50 }
 0x15b   : > { %v2192_v9 = vpop.permute.xlu0 %980 }
 0x15c   : > { %v983_v13 = vadd.f32 %v2192_v9, %v958_v8  ;;  %v984_v14 = vadd.f32 %v2192_v9, %v959_v4 }
 0x15d   : > { %v915_v11 = vpop.permute.xlu1 %914 }
 0x15e   : > { %v999_v15 = vmax.f32 %v983_v13, 0.0  ;;  %v1000_v16 = vmax.f32 %v984_v14, 0.0  ;;  %v960_v18 = vadd.f32 %v915_v11, %v880_v10 }
 0x15f   : > { %v837_v40 = vpop.permute.xlu0 %836 }
 0x160   : > { %v1015_v19 = vpack.c.bf16 %v1000_v16, %v999_v15  ;;  %v881_v25 = vadd.f32 %v837_v40, %v1913_v60  ;;  %v985_v27 = vadd.f32 %v2192_v9, %v960_v18 }
 0x161   : > { %v839_v33 = vpop.permute.xlu1 %838 }
 0x162   : > { %1047 = vrot.lane.b32.xlu1 %v1015_v19, %s1784_s29  ;;  %v882_v41 = vadd.f32 %v839_v33, %v1934_v7  ;;  %v1001_v30 = vmax.f32 %v985_v27, 0.0 }
 0x163   : > { %v917_v63 = vpop.permute.xlu0 %916 }
 0x164   : > { %v961_v28 = vadd.f32 %v917_v63, %v881_v25 }
 0x165   : > { %v919_v36 = vpop.permute.xlu1 %918 }
 0x166   : > { %v986_v29 = vadd.f32 %v2192_v9, %v961_v28  ;;  %v962_v47 = vadd.f32 %v919_v36, %v882_v41 }
 0x167   : > { %v841_v50 = vpop.permute.xlu0 %840 }
 0x168   : > { %v1002_v37 = vmax.f32 %v986_v29, 0.0  ;;  %v883_v42 = vadd.f32 %v841_v50, %v1951_v17  ;;  %v987_v46 = vadd.f32 %v2192_v9, %v962_v47 }
 0x169   : > { %v843_v38 = vpop.permute.xlu1 %842 }
 0x16a   : > { %v1016_v48 = vpack.c.bf16 %v1002_v37, %v1001_v30  ;;  %v884_v53 = vadd.f32 %v843_v38, %v1965_v26  ;;  %v1003_v1 = vmax.f32 %v987_v46, 0.0 }
 0x16b   : > { %v921_v60 = vpop.permute.xlu0 %920 }
 0x16c   : > { %v963_v49 = vadd.f32 %v921_v60, %v883_v42  ;;  %1049 = vrot.lane.b32.xlu0 %v1016_v48, %s1784_s29 }
 0x16d   : > { %v923_v52 = vpop.permute.xlu1 %922 }
 0x16e   : > { %v988_v7 = vadd.f32 %v2192_v9, %v963_v49  ;;  %v964_v8 = vadd.f32 %v923_v52, %v884_v53 }
 0x16f   : > { %v845_v55 = vpop.permute.xlu0 %844 }
 0x170   : > { %v1004_v4 = vmax.f32 %v988_v7, 0.0  ;;  %v885_v13 = vadd.f32 %v845_v55, %v1981_v44  ;;  %v989_v10 = vadd.f32 %v2192_v9, %v964_v8 }
 0x171   : > { %v847_v11 = vpop.permute.xlu1 %846 }
 0x172   : > { %v1017_v17 = vpack.c.bf16 %v1004_v4, %v1003_v1  ;;  %v886_v40 = vadd.f32 %v847_v11, %v1997_v59  ;;  %v1005_v33 = vmax.f32 %v989_v10, 0.0 }
 0x173   : > { %v925_v14 = vpop.permute.xlu0 %924 }
 0x174   : > { %v965_v15 = vadd.f32 %v925_v14, %v885_v13  ;;  %1051 = vrot.lane.b32.xlu1 %v1017_v17, %s1784_s29 }
 0x175   : > { %v927_v16 = vpop.permute.xlu1 %926 }
 0x176   : > { %v990_v26 = vadd.f32 %v2192_v9, %v965_v15  ;;  %v966_v25 = vadd.f32 %v927_v16, %v886_v40 }
 0x177   : > { %v849_v18 = vpop.permute.xlu0 %848 }
 0x178   : > { %v1006_v19 = vmax.f32 %v990_v26, 0.0  ;;  %v887_v27 = vadd.f32 %v849_v18, %v2013_v12  ;;  %v991_v36 = vadd.f32 %v2192_v9, %v966_v25 }
 0x179   : > { %v851_v63 = vpop.permute.xlu1 %850 }
 0x17a   : > { %v1018_v44 = vpack.c.bf16 %v1006_v19, %v1005_v33  ;;  %v888_v50 = vadd.f32 %v851_v63, %v2029_v24  ;;  %v1007_v37 = vmax.f32 %v991_v36, 0.0 }
 0x17b   : > { %v929_v28 = vpop.permute.xlu0 %928 }
 0x17c   : > { %v967_v41 = vadd.f32 %v929_v28, %v887_v27  ;;  %1053 = vrot.lane.b32.xlu0 %v1018_v44, %s1784_s29 }
 0x17d   : > { %v931_v29 = vpop.permute.xlu1 %930 }
 0x17e   : > { %v992_v59 = vadd.f32 %v2192_v9, %v967_v41  ;;  %v968_v38 = vadd.f32 %v931_v29, %v888_v50 }
 0x17f   : > { %v853_v30 = vpop.permute.xlu0 %852 }
 0x180   : > { %v1008_v47 = vmax.f32 %v992_v59, 0.0  ;;  %v889_v48 = vadd.f32 %v853_v30, %v2045_v45  ;;  %v993_v46 = vadd.f32 %v2192_v9, %v968_v38 }
 0x181   : > { %v855_v42 = vpop.permute.xlu1 %854 }
 0x182   : > { %v1019_v12 = vpack.c.bf16 %v1008_v47, %v1007_v37  ;;  %v890_v53 = vadd.f32 %v855_v42, %v1874_v35  ;;  %v1009_v55 = vmax.f32 %v993_v46, 0.0 }
 0x183   : > { %v933_v60 = vpop.permute.xlu0 %932 }
 0x184   : > { %v969_v49 = vadd.f32 %v933_v60, %v889_v48  ;;  %1055 = vrot.lane.b32.xlu1 %v1019_v12, %s1784_s29 }
 0x185   : > { %v935_v52 = vpop.permute.xlu1 %934 }
 0x186   : > { %v994_v24 = vadd.f32 %v2192_v9, %v969_v49  ;;  %v970_v4 = vadd.f32 %v935_v52, %v890_v53 }
 0x187   : > { %v857_v7 = vpop.permute.xlu0 %856 }
 0x188   : > { %v1010_v1 = vmax.f32 %v994_v24, 0.0  ;;  %v891_v11 = vadd.f32 %v857_v7, %v1887_v43  ;;  %v995_v17 = vadd.f32 %v2192_v9, %v970_v4 }
 0x189   : > { %v859_v8 = vpop.permute.xlu1 %858 }
 0x18a   : > { %v1020_v45 = vpack.c.bf16 %v1010_v1, %v1009_v55  ;;  %v892_v15 = vadd.f32 %v859_v8, %v1898_v51  ;;  %v1011_v40 = vmax.f32 %v995_v17, 0.0 }
 0x18b   : > { %v937_v13 = vpop.permute.xlu0 %936 }
 0x18c   : > { %v971_v14 = vadd.f32 %v937_v13, %v891_v11  ;;  %1057 = vrot.lane.b32.xlu0 %v1020_v45, %s1784_s29 }
 0x18d   : > { %v939_v10 = vpop.permute.xlu1 %938 }
 0x18e   : > { %v996_v35 = vadd.f32 %v2192_v9, %v971_v14  ;;  %v972_v18 = vadd.f32 %v939_v10, %v892_v15 }
 0x18f   : > { %v861_v16 = vpop.permute.xlu0 %860 }
 0x190   : > { %v1012_v26 = vmax.f32 %v996_v35, 0.0  ;;  %v893_v33 = vadd.f32 %v861_v16, %v1915_v61  ;;  %v997_v25 = vadd.f32 %v2192_v9, %v972_v18 }
 0x192   : > { %v1021_v19 = vpack.c.bf16 %v1012_v26, %v1011_v40  ;;  %v1013_v44 = vmax.f32 %v997_v25, 0.0 }
 0x193   : > { %v941_v43 = vpop.permute.xlu0 %940 }
 0x194   : > { %v973_v63 = vadd.f32 %v941_v43, %v893_v33  ;;  %1059 = vrot.lane.b32.xlu1 %v1021_v19, %s1784_s29 }
 0x196   : > { %v998_v27 = vadd.f32 %v2192_v9, %v973_v63 }
 0x198   : > { %v1014_v28 = vmax.f32 %v998_v27, 0.0 }
 0x19a   : > { %v1022_v51 = vpack.c.bf16 %v1014_v28, %v1013_v44 }
 0x19c   : > { %1061 = vrot.lane.b32.xlu0 %v1022_v51, %s1784_s29 }
 0x1d4   : > { %v1048_v36 = vpop.permute.xlu1 %1047 }
 0x1d5   : > { %1686 = vmatmul.mubr.msk.bf16.vlgmr.msra.gmra.mxu1 %vm1127_vm4, %v1048_v36  ;;  %1726 = vmatprep.mubr.msk.bf16.mxu0 %vm1127_vm4, %v1048_v36 }
 0x1d6   : > { %1194 = vmatprep.mubr.bf16.mxu1 %v1783_v5 }
 0x1de   : > { %v1050_v61 = vpop.permute.xlu0 %1049 }
 0x1df   : > { %1687 = vmatmul.mubr.msk.bf16.gmra.mxu1 %vm1127_vm4, %v1050_v61  ;;  %1727 = vmatmul.mubr.msk.bf16.vlgmr.msra.gmra.mxu0 %vm1127_vm4, %v1050_v61 }
 0x1e0   : > { %1204 = vmatprep.mubr.bf16.mxu1 %v1783_v5 }
 0x1e6   : > { %v1052_v9 = vpop.permute.xlu1 %1051 }
 0x1e7   : > { %1688 = vmatmul.mubr.msk.bf16.gmra.mxu1 %vm1127_vm4, %v1052_v9  ;;  %1730 = vmatprep.mubr.msk.bf16.mxu0 %vm1127_vm4, %v1052_v9 }
 0x1e8   : > { %1214 = vmatprep.mubr.bf16.mxu1 %v1783_v5 }
 0x1ee   : > { %v1054_v41 = vpop.permute.xlu0 %1053 }
 0x1ef   : > { %1689 = vmatmul.mubr.msk.bf16.gmra.mxu1 %vm1127_vm4, %v1054_v41  ;;  %1731 = vmatmul.mubr.msk.bf16.gmra.mxu0 %vm1127_vm4, %v1054_v41 }
 0x1f0   : > { %1224 = vmatprep.mubr.bf16.mxu1 %v1783_v5 }
 0x1f6   : > { %v1056_v29 = vpop.permute.xlu1 %1055 }
 0x1f7   : > { %1690 = vmatmul.mubr.msk.bf16.gmra.mxu1 %vm1127_vm4, %v1056_v29  ;;  %1734 = vmatprep.mubr.msk.bf16.mxu0 %vm1127_vm4, %v1056_v29 }
 0x1f8   : > { %1234 = vmatprep.mubr.bf16.mxu1 %v1783_v5 }
 0x1fe   : > { %v1058_v50 = vpop.permute.xlu0 %1057 }
 0x1ff   : > { %1691 = vmatmul.mubr.msk.bf16.gmra.mxu1 %vm1127_vm4, %v1058_v50  ;;  %1735 = vmatmul.mubr.msk.bf16.gmra.mxu0 %vm1127_vm4, %v1058_v50 }
 0x200   : > { %1244 = vmatprep.mubr.bf16.mxu1 %v1783_v5 }
 0x206   : > { %v1060_v59 = vpop.permute.xlu1 %1059 }
 0x207   : > { %1692 = vmatmul.mubr.msk.bf16.gmra.mxu1 %vm1127_vm4, %v1060_v59  ;;  %1738 = vmatprep.mubr.msk.bf16.mxu0 %vm1127_vm4, %v1060_v59 }
 0x208   : > { %1254 = vmatprep.mubr.bf16.mxu1 %v1783_v5 }
 0x20e   : > { %v1062_v30 = vpop.permute.xlu0 %1061 }
 0x20f   : > { %1693 = vmatmul.mubr.msk.bf16.gmra.mxu1 %vm1127_vm4, %v1062_v30  ;;  %1739 = vmatmul.mubr.msk.bf16.gmra.mxu0 %vm1127_vm4, %v1062_v30  ;;  %vm2479_vm4 = vcmp.lt.s32.totalorder %v1872_v34, 7 }
 0x295   : > { %v2255_v37 = vpop.f32.mrf.mxu1 }
 0x297   : > { %v2257_v47 = vpop.f32.mrf.mxu1 }
 0x299   : > { %v2259_v38 = vpop.f32.mrf.mxu1 }
 0x29a   : > { %v1363_v17 = vrot.slane %v2259_v38, 7 }
 0x29b   : > { %v2261_v42 = vpop.f32.mrf.mxu1 }
 0x29f   : > { %v1196_v48 = vpop.f32.mrf.mxu1  ;;  %v2263_v12 = vpop.f32.mrf.mxu0 }
 0x2a0   : > { %v1364_v11 = vrot.slane %v1196_v48, 7  ;;  %v1412_v61 = vrot.slane %v2263_v12, 1 }
 0x2a1   : > { %v1198_v60 = vpop.f32.mrf.mxu1  ;;  %v2265_v49 = vpop.f32.mrf.mxu0 }
 0x2a2   : > { %v1391_v16 = vsel %vm668_vm3, %v1363_v17, %v1364_v11  ;;  %v1410_v6 = vrot.slane %v2265_v49, 1 }
 0x2a3   : > { %v1200_v46 = vpop.f32.mrf.mxu1  ;;  %v1729_v53 = vpop.f32.mrf.mxu0  ;;  %v1396_v25 = vsel %vm1927_vm7, %v1391_v16, 0.0  ;;  %vm2480_vm7 = vmmov %vm2479_vm4 }
 0x2a4   : > { %v1365_v35 = vrot.slane %v1200_v46, 7  ;;  %v1413_v40 = vrot.slane %v1729_v53, 1  ;;  %v1460_v29 = vadd.f32 %v1396_v25, %v1198_v60 }
 0x2a5   : > { %v1202_v5 = vpop.f32.mrf.mxu1  ;;  %v2267_v55 = vpop.f32.mrf.mxu0 }
 0x2a6   : > { %v1390_v63 = vsel %vm668_vm3, %v1364_v11, %v1365_v35  ;;  %v1438_v59 = vsel %vm2480_vm7, %v1412_v61, %v1413_v40 }
 0x2a7   : > { %v1206_v52 = vpop.f32.mrf.mxu1  ;;  %v1461_v3 = vadd.f32 %v1390_v63, %v1202_v5 }
 0x2a8   : > { %v1366_v26 = vrot.slane %v1206_v52, 7 }
 0x2a9   : > { %v1208_v24 = vpop.f32.mrf.mxu1 }
 0x2aa   : > { %v1389_v44 = vsel %vm668_vm3, %v1365_v35, %v1366_v26 }
 0x2ab   : > { %v1210_v7 = vpop.f32.mrf.mxu1  ;;  %v1398_v30 = vsel %vm1958_vm8, %v1389_v44, 0.0  ;;  %vm2482_vm8 = vmmov %vm2479_vm4 }
 0x2ac   : > { %v1367_v28 = vrot.slane %v1210_v7, 7  ;;  %v1476_v7 = vadd.f32 %v1460_v29, %v1438_v59 }
 0x2ad   : > { %v1212_v1 = vpop.f32.mrf.mxu1 }
 0x2ae   : > { %v1388_v12 = vsel %vm668_vm3, %v1366_v26, %v1367_v28 }
 0x2af   : > { %v1216_v4 = vpop.f32.mrf.mxu1  ;;  %v2269_v8 = vpop.f32.mrf.mxu0  ;;  %v1463_v35 = vadd.f32 %v1388_v12, %v1212_v1  ;;  %v1362_v1 = vrot.slane %v2255_v37, 7 }
 0x2b0   : > { %v1368_v51 = vrot.slane %v1216_v4, 7  ;;  %v1416_v9 = vrot.slane %v2269_v8, 1  ;;  %v1462_v4 = vadd.f32 %v1398_v30, %v1208_v24 }
 0x2b1   : > { %v1218_v45 = vpop.f32.mrf.mxu1  ;;  %v1315_v13 = vpop.f32.mrf.mxu0  ;;  %v1392_v31 = vsel %vm668_vm3, %v1362_v1, %v1363_v17 }
 0x2b2   : > { %v1414_v14 = vrot.slane %v1315_v13, 1  ;;  %v1387_v46 = vsel %vm668_vm3, %v1367_v28, %v1368_v51  ;;  %v2311_v13 = vld [vmem:[%s2442_s4] ss:$0 sm:$0xff] }
 0x2b3   : > { %v1220_v10 = vpop.f32.mrf.mxu1  ;;  %v2272_v15 = vpop.f32.mrf.mxu0  ;;  %v1499_v54 = vadd.f32 %v2311_v13, %v1476_v7 }
 0x2b4   : > { %v1437_v19 = vsel %vm2479_vm4, %v1413_v40, %v1414_v14  ;;  %v1369_v52 = vrot.slane %v1220_v10, 7  ;;  %v1411_v10 = vrot.slane %v2267_v55, 1  ;;  %v1417_v0 = vrot.slane %v2272_v15, 1 }
 0x2b5   : > { %v1222_v18 = vpop.f32.mrf.mxu1  ;;  %v1318_v33 = vpop.f32.mrf.mxu0  ;;  %v1445_v41 = vsel %vm1973_vm9, %v1437_v19, 0.0  ;;  %vm2481_vm9 = vmmov %vm2479_vm4 }
 0x2b6   : > { %v1415_v27 = vrot.slane %v1318_v33, 1  ;;  %v1477_v32 = vadd.f32 %v1461_v3, %v1445_v41  ;;  %v1386_v16 = vsel %vm668_vm3, %v1368_v51, %v1369_v52  ;;  %v1439_v15 = vsel %vm2482_vm8, %v1411_v10, %v1412_v61 }
 0x2b7   : > { %v1226_v43 = vpop.f32.mrf.mxu1  ;;  %v1465_v51 = vadd.f32 %v1386_v16, %v1222_v18  ;;  %vm1589_vm8 = vcmask 1043459  }
 0x2b8   : > { %v1435_v48 = vsel %vm2479_vm4, %v1415_v27, %v1416_v9  ;;  %v1436_v5 = vsel %vm2481_vm9, %v1414_v14, %v1415_v27  ;;  %v1370_v53 = vrot.slane %v1226_v43, 7  ;;  %v1400_v14 = vsel %vm1990_vm10, %v1387_v46, 0.0  ;;  %vm2483_vm10 = vmmov %vm2479_vm4 }
 0x2b9   : > { %v1228_v36 = vpop.f32.mrf.mxu1  ;;  %v1447_v23 = vsel %vm2001_vm11, %v1435_v48, 0.0  ;;  %v1500_v24 = vadd.f32 %v2311_v13, %v1477_v32  ;;  %v1478_v40 = vadd.f32 %v1462_v4, %v1436_v5  ;;  %v1464_v28 = vadd.f32 %v1400_v14, %v1218_v45  ;;  %vm2484_vm11 = vmmov %vm2479_vm4 }
 0x2ba   : > { %v1479_v19 = vadd.f32 %v1463_v35, %v1447_v23  ;;  %v1385_v43 = vsel %vm668_vm3, %v1369_v52, %v1370_v53  ;;  %v1434_v46 = vsel %vm2484_vm11, %v1416_v9, %v1417_v0  ;;  %v1443_v52 = vsel %vm1909_vm5, %v1439_v15, 0.0  ;;  %vm2487_vm5 = vmmov %vm2479_vm4 }
 0x2bb   : > { %v1230_v50 = vpop.f32.mrf.mxu1  ;;  %v1520_v29 = vmax.f32 %v1499_v54, %v1500_v24  ;;  %v1402_v3 = vsel %vm2022_vm12, %v1385_v43, 0.0  ;;  %v1501_v12 = vadd.f32 %v2311_v13, %v1478_v40  ;;  %vm2485_vm12 = vmmov %vm2479_vm4  ;;  %vm1587_vm9 = vcmask 1042434  }
 0x2bc   : > { %v1371_v25 = vrot.slane %v1230_v50, 7  ;;  %v1502_v61 = vadd.f32 %v2311_v13, %v1479_v19  ;;  %v1466_v5 = vadd.f32 %v1402_v3, %v1228_v36  ;;  %v1459_v36 = vadd.f32 %v1392_v31, %v2261_v42 }
 0x2bd   : > { %v1232_v60 = vpop.f32.mrf.mxu1  ;;  %vm1593_vm11 = vcmask 1045509  }
 0x2be   : > { %v1384_v45 = vsel %vm668_vm3, %v1370_v53, %v1371_v25  ;;  %v1527_v17 = vmax.f32 %v1501_v12, %v1502_v61 }
 0x2bf   : > { %v2304_v8 = vpop.f32.mrf.mxu1  ;;  %v2306_v11 = vpop.f32.mrf.mxu0  ;;  %v1467_v7 = vadd.f32 %v1384_v45, %v1232_v60 }
 0x2c0   : > { %v1372_v50 = vrot.slane %v2304_v8, 7  ;;  %v1420_v20 = vrot.slane %v2306_v11, 1  ;;  %v1521_v8 = vrot.slane %v1520_v29, 4  ;;  %v1480_v11 = vadd.f32 %v1464_v28, %v1434_v46 }
 0x2c1   : > { %v1238_v26 = vpop.f32.mrf.mxu1  ;;  %v1331_v33 = vpop.f32.mrf.mxu0 }
 0x2c2   : > { %v1418_v63 = vrot.slane %v1331_v33, 1  ;;  %v1383_v9 = vsel %vm668_vm3, %v1371_v25, %v1372_v50  ;;  %v1475_v33 = vadd.f32 %v1459_v36, %v1443_v52  ;;  %v2371_v25 = vmax.f32 %v1520_v29, %v1521_v8 }
 0x2c3   : > { %v1240_v27 = vpop.f32.mrf.mxu1  ;;  %v2324_v44 = vpop.f32.mrf.mxu0  ;;  %v1503_v42 = vadd.f32 %v2311_v13, %v1480_v11 }
 0x2c4   : > { %v1433_v41 = vsel %vm2483_vm10, %v1417_v0, %v1418_v63  ;;  %v1421_v60 = vrot.slane %v2324_v44, 1  ;;  %v1404_v0 = vsel %vm2054_vm14, %v1383_v9, 0.0  ;;  %v1373_v40 = vrot.slane %v1240_v27, 7  ;;  %vm2488_vm14 = vmmov %vm2479_vm4 }
 0x2c5   : > { %v1449_v59 = vsel %vm2037_vm13, %v1433_v41, 0.0  ;;  %v1242_v30 = vpop.f32.mrf.mxu1  ;;  %v1334_v48 = vpop.f32.mrf.mxu0  ;;  %vm2486_vm13 = vmmov %vm2479_vm4  ;;  %v1468_v54 = vadd.f32 %v1404_v0, %v1238_v26  ;;  %v1440_v26 = vsel %vm2488_vm14, %v1410_v6, %v1411_v10  ;;  %v1498_v3 = vadd.f32 %v2311_v13, %v1475_v33 }
 0x2c6   : > { %v1419_v18 = vrot.slane %v1334_v48, 1  ;;  %v1481_v53 = vadd.f32 %v1465_v51, %v1449_v59  ;;  %v1430_v44 = vsel %vm2487_vm5, %v1420_v20, %v1421_v60  ;;  %v1382_v41 = vsel %vm668_vm3, %v1372_v50, %v1373_v40 }
 0x2c7   : > { %v2344_v32 = vpop.f32.mrf.mxu1  ;;  %v1523_v61 = vrot.slane %v2371_v25, 2  ;;  %v1484_v46 = vadd.f32 %v1468_v54, %v1430_v44  ;;  %vm1591_vm10 = vcmask 1044484  }
 0x2c8   : > { %v1431_v4 = vsel %vm2485_vm12, %v1419_v18, %v1420_v20  ;;  %v1432_v38 = vsel %vm2486_vm13, %v1418_v63, %v1419_v18  ;;  %v1504_v16 = vadd.f32 %v2311_v13, %v1481_v53  ;;  %v1374_v19 = vrot.slane %v2344_v32, 7 }
 0x2c9   : > { %v2360_v23 = vpop.f32.mrf.mxu1  ;;  %v1451_v58 = vsel %vm2063_vm15, %v1431_v4, 0.0  ;;  %v1482_v35 = vadd.f32 %v1466_v5, %v1432_v38  ;;  %v1528_v63 = vrot.slane %v1527_v17, 4  ;;  %v1469_v20 = vadd.f32 %v1382_v41, %v1242_v30  ;;  %vm2489_vm15 = vmmov %vm2479_vm4 }
 0x2ca   : > { %v1483_v14 = vadd.f32 %v1467_v7, %v1451_v58  ;;  %v1534_v51 = vmax.f32 %v1503_v42, %v1504_v16  ;;  %v1381_v59 = vsel %vm668_vm3, %v1373_v40, %v1374_v19  ;;  %v1507_v37 = vadd.f32 %v2311_v13, %v1484_v46 }
 0x2cb   : > { %v1250_v24 = vpop.f32.mrf.mxu1  ;;  %v1505_v57 = vadd.f32 %v2311_v13, %v1482_v35  ;;  %v1529_v45 = vmax.f32 %v1527_v17, %v1528_v63  ;;  %v1406_v5 = vsel %vm2082_vm0, %v1381_v59, 0.0  ;;  %vm2490_vm0 = vnez %v2450_v2 }
 0x2cc   : > { %v1506_v15 = vadd.f32 %v2311_v13, %v1483_v14  ;;  %v1375_v49 = vrot.slane %v1250_v24, 7  ;;  %v1535_v52 = vrot.slane %v1534_v51, 4  ;;  %v1470_v14 = vadd.f32 %v1406_v5, %v2360_v23 }
 0x2cd   : > { %v1252_v43 = vpop.f32.mrf.mxu1  ;;  %vm1595_vm12 = vcmask 1046534   ;;  %vm1597_vm13 = vcmask 1047559  }
 0x2ce   : > { %v1541_v55 = vmax.f32 %v1505_v57, %v1506_v15  ;;  %v1380_v62 = vsel %vm668_vm3, %v1374_v19, %v1375_v49  ;;  %v1536_v33 = vmax.f32 %v1534_v51, %v1535_v52 }
 0x2cf   : > { %v1256_v27 = vpop.f32.mrf.mxu1  ;;  %v1740_v28 = vpop.f32.mrf.mxu0  ;;  %v1471_v19 = vadd.f32 %v1380_v62, %v1252_v43 }
 0x2d0   : > { %v1376_v29 = vrot.slane %v1256_v27, 7  ;;  %v1424_v9 = vrot.slane %v1740_v28, 1  ;;  %v1542_v36 = vrot.slane %v1541_v55, 4  ;;  %v1530_v27 = vrot.slane %v1529_v45, 2 }
 0x2d1   : > { %v1258_v48 = vpop.f32.mrf.mxu1  ;;  %v1347_v12 = vpop.f32.mrf.mxu0  ;;  %v1537_v41 = vrot.slane %v1536_v33, 2 }
 0x2d2   : > { %v1379_v50 = vsel %vm668_vm3, %v1375_v49, %v1376_v29  ;;  %v1422_v18 = vrot.slane %v1347_v12, 1  ;;  %v1543_v54 = vmax.f32 %v1541_v55, %v1542_v36  ;;  %v1524_v12 = vmax.f32 %v2371_v25, %v1523_v61 }
 0x2d3   : > { %v1408_v10 = vsel %vm2113_vm2, %v1379_v50, 0.0  ;;  %v1260_v32 = vpop.f32.mrf.mxu1  ;;  %v1741_v31 = vpop.f32.mrf.mxu0  ;;  %v1538_v55 = vmax.f32 %v1536_v33, %v1537_v41 }
 0x2d4   : > { %v1429_v53 = vsel %vm2489_vm15, %v1421_v60, %v1422_v18  ;;  %v1377_v7 = vrot.slane %v1260_v32, 7  ;;  %v1472_v4 = vadd.f32 %v1408_v10, %v1258_v48  ;;  %v1425_v30 = vrot.slane %v1741_v31, 1 }
 0x2d5   : > { %v1453_v38 = vsel %vm2097_vm1, %v1429_v53, 0.0  ;;  %v1262_v11 = vpop.f32.mrf.mxu1  ;;  %v1350_v58 = vpop.f32.mrf.mxu0  ;;  %vm2491_vm1 = vmmov %vm2479_vm4  ;;  %vm2495_vm4 = vnez %v2476_v56  ;;  %v1544_v34 = vrot.slane %v1543_v54, 2 }
 0x2d6   : > { %v1485_v8 = vadd.f32 %v1469_v20, %v1453_v38  ;;  %v1393_v21 = vsel %vm668_vm3, %v1377_v7, %v1362_v1  ;;  %v1378_v17 = vsel %vm668_vm3, %v1376_v29, %v1377_v7  ;;  %v1426_v60 = vsel %vm2491_vm1, %v1424_v9, %v1425_v30  ;;  %vm2492_vm2 = vmmov %vm2491_vm1 }
 0x2d7   : > { %v1394_v39 = vsel %vm2490_vm0, %v1393_v21, 0.0  ;;  %v1441_v35 = vsel %vm2492_vm2, %v1425_v30, %v1410_v6  ;;  %v1488_v0 = vadd.f32 %v1472_v4, %v1426_v60  ;;  %v1473_v2 = vadd.f32 %v1378_v17, %v1262_v11  ;;  %vm2493_vm3 = vmmov %vm2491_vm1 }
 0x2d8   : > { %v1508_v1 = vadd.f32 %v2311_v13, %v1485_v8  ;;  %v1458_v24 = vadd.f32 %v1394_v39, %v2257_v47  ;;  %v1457_v16 = vsel %vm2149_vm6, %v1441_v35, 0.0  ;;  %v1423_v40 = vrot.slane %v1350_v58, 1  ;;  %vm2494_vm7 = vmmov %vm2491_vm1 }
 0x2d9   : > { %v1489_v6 = vadd.f32 %v1473_v2, %v1457_v16  ;;  %v1511_v43 = vadd.f32 %v2311_v13, %v1488_v0  ;;  %v1545_v32 = vmax.f32 %v1543_v54, %v1544_v34  ;;  %vm1585_vm6 = vcmask 1041409  }
 0x2da   : > { %v1548_v42 = vmax.f32 %v1507_v37, %v1508_v1  ;;  %v1474_v63 = vadd.f32 %v1458_v24, %v1440_v26  ;;  %v1427_v44 = vsel %vm2493_vm3, %v1423_v40, %v1424_v9  ;;  %v1428_v23 = vsel %vm2494_vm7, %v1422_v18, %v1423_v40 }
 0x2db   : > { %v1455_v22 = vsel %vm2495_vm4, %v1427_v44, 0.0  ;;  %v1486_v15 = vadd.f32 %v1470_v14, %v1428_v23  ;;  %v1512_v28 = vadd.f32 %v2311_v13, %v1489_v6  ;;  %v1531_v18 = vmax.f32 %v1529_v45, %v1530_v27 }
 0x2dc   : > { %v1549_v57 = vrot.slane %v1548_v42, 4  ;;  %v1497_v47 = vadd.f32 %v2311_v13, %v1474_v63  ;;  %v1487_v51 = vadd.f32 %v1471_v19, %v1455_v22  ;;  %v1546_v61 = vrot.slane %v1545_v32, 1 }
 0x2dd   : > { %v1509_v26 = vadd.f32 %v2311_v13, %v1486_v15  ;;  %v1562_v59 = vmax.f32 %v1511_v43, %v1512_v28  ;;  %v1532_v7 = vrot.slane %v1531_v18, 1 }
 0x2de   : > { %v1550_v49 = vmax.f32 %v1548_v42, %v1549_v57  ;;  %v1513_v29 = vmax.f32 %v1497_v47, %v1498_v3  ;;  %v1510_v48 = vadd.f32 %v2311_v13, %v1487_v51  ;;  %v1525_v3 = vrot.slane %v1524_v12, 1 }
 0x2df   : > { %v1563_v46 = vrot.slane %v1562_v59, 4  ;;  %v1539_v13 = vrot.slane %v1538_v55, 1  ;;  %v1533_v21 = vmax.f32 %v1531_v18, %v1532_v7  ;;  %v1547_v39 = vmax.f32 %v1545_v32, %v1546_v61 }
 0x2e0   : > { %v1551_v56 = vrot.slane %v1550_v49, 2  ;;  %v1514_v50 = vrot.slane %v1513_v29, 4  ;;  %v1555_v20 = vmax.f32 %v1509_v26, %v1510_v48  ;;  %v1526_v30 = vmax.f32 %v1524_v12, %v1525_v3 }
 0x2e1   : > { %v1564_v31 = vmax.f32 %v1562_v59, %v1563_v46  ;;  %v1540_v17 = vmax.f32 %v1538_v55, %v1539_v13  ;;  %v1571_v1 = vmax.f32 %v1533_v21, 0.0  ;;  %v1573_v40 = vmax.f32 %v1547_v39, 0.0 }
 0x2e2   : > { %v1515_v10 = vmax.f32 %v1513_v29, %v1514_v50  ;;  %v1556_v52 = vrot.slane %v1555_v20, 4  ;;  %v1552_v5 = vmax.f32 %v1550_v49, %v1551_v56  ;;  %v1570_v35 = vmax.f32 %v1526_v30, 0.0 }
 0x2e3   : > { %v1565_v9 = vrot.slane %v1564_v31, 2  ;;  %v1572_v0 = vmax.f32 %v1540_v17, 0.0 }
 0x2e4   : > { %v1516_v53 = vrot.slane %v1515_v10, 2  ;;  %v1557_v4 = vmax.f32 %v1555_v20, %v1556_v52  ;;  %v1553_v62 = vrot.slane %v1552_v5, 1 }
 0x2e5   : > { %v1566_v38 = vmax.f32 %v1564_v31, %v1565_v9 }
 0x2e6   : > { %v1517_v25 = vmax.f32 %v1515_v10, %v1516_v53  ;;  %v1558_v45 = vrot.slane %v1557_v4, 2  ;;  %v1554_v37 = vmax.f32 %v1552_v5, %v1553_v62 }
 0x2e7   : > { %v1567_v36 = vrot.slane %v1566_v38, 1 }
 0x2e8   : > { %v1518_v8 = vrot.slane %v1517_v25, 1  ;;  %v1559_v11 = vmax.f32 %v1557_v4, %v1558_v45  ;;  %v1574_v19 = vmax.f32 %v1554_v37, 0.0 }
 0x2e9   : > { %v1568_v2 = vmax.f32 %v1566_v38, %v1567_v36 }
 0x2ea   : > { %v1519_v58 = vmax.f32 %v1517_v25, %v1518_v8  ;;  %v1560_v60 = vrot.slane %v1559_v11, 1 }
 0x2eb   : > { %v1576_v6 = vmax.f32 %v1568_v2, 0.0 }
 0x2ec   : > { %v1569_v14 = vmax.f32 %v1519_v58, 0.0  ;;  %v1561_v24 = vmax.f32 %v1559_v11, %v1560_v60 }
 0x2ee   : > { %v1586_v16 = vsel %vm1585_vm6, %v1570_v35, %v1569_v14  ;;  %v1575_v63 = vmax.f32 %v1561_v24, 0.0 }
 0x2ef   : > { %v1588_v33 = vsel %vm1587_vm9, %v1571_v1, %v1586_v16 }
 0x2f0   : > { %v1590_v42 = vsel %vm1589_vm8, %v1572_v0, %v1588_v33 }
 0x2f1   : > { %v1592_v54 = vsel %vm1591_vm10, %v1573_v40, %v1590_v42 }
 0x2f2   : > { %v1594_v44 = vsel %vm1593_vm11, %v1574_v19, %v1592_v54 }
 0x2f3   : > { %v1596_v23 = vsel %vm1595_vm12, %v1575_v63, %v1594_v44 }
 0x2f4   : > { %v1598_v57 = vsel %vm1597_vm13, %v1576_v6, %v1596_v23 }
 0x2f5   : > { %1600 = vst [vmem:[%s227_s13] sm:$0xff] %v1598_v57 }
 0x2f6 PF: > { %s15_s18 = sadd.s32 1, %s1780_s18  }
 0x2f7   : > { %p12_p5 = scmp.ge.s32.totalorder %s15_s18, 4  }
 0x2f9   :  { %14 = sbr.rel (!%p12_p5) target bundleno = 1 (0x1), region = 70 }

</bundles_post_ra>
